<compile_context>
chip_gen: v5e
topology: v5e:2x2
jax: 0.10.0
libtpu: 0.0.40
codegen_flags: <defaults>
</compile_context>

<pallas_src>
import functools
import math

import numpy as np
import jax
import jax.numpy as jnp
from jax.experimental import pallas as pl
from jax.experimental.pallas import tpu as pltpu


# ----------------------------- configuration -----------------------------
B = 2            # batch
T = 8            # sequence length actually used (<= block_size)
C = 32           # n_embd
N_HEAD = 4       # n_head
BLOCK_SIZE = 16  # config.block_size
OBS_DIM = 3      # config.observation_dim
ACT_DIM = 1      # config.action_dim
JOINED_DIM = OBS_DIM + ACT_DIM + 2  # = 6


# ------------------------------- kernel ----------------------------------
def causal_attn_kernel(x_ref, p_ref, o_ref, y_ref, *, batch, seq, n_embd, n_head):
    """Single gridless invocation — whole (B, T, C) problem.

    x_ref : (B*T, C)              VMEM  flattened activations
    p_ref : (B*H*T + C + 1, 4C)   VMEM  fused parameter slab:
              rows [0 : B*H*T)        lanes [0:T)    tiled additive mask (0 / -1e9)
              rows [B*H*T : B*H*T+C)  lanes [0:3C)   [Wq*scale | Wk | Wv]^T
                                      lanes [3C:4C)  Wproj^T
              row  [B*H*T+C]          lanes [0:3C)   [bq*scale | bk | bv]
                                      lanes [3C:4C)  bproj
    o_ref : (B*T, C)              VMEM  output
    y_ref : (B*T, C)              VMEM  scratch: per-head outputs before proj
    """
    Bv, Tv, Cv, H = batch, seq, n_embd, n_head
    D = Cv // H
    mrows = Bv * H * Tv

    # Trace-time consistency checks: unroll bounds must match the ref shapes.
    assert x_ref.shape == (Bv * Tv, Cv), x_ref.shape
    assert p_ref.shape == (mrows + Cv + 1, 4 * Cv), p_ref.shape
    assert o_ref.shape == (Bv * Tv, Cv), o_ref.shape
    assert y_ref.shape == (Bv * Tv, Cv), y_ref.shape

    x = x_ref[...]                                            # (B*T, C)
    amask = p_ref[pl.ds(0, mrows), 0:Tv]                      # (B*H*T, T) additive mask
    w = p_ref[pl.ds(mrows, Cv), :]                            # (C, 4C)
    bias = p_ref[pl.ds(mrows + Cv, 1), :]                     # (1, 4C)
    wqkv = w[:, 0:3 * Cv]                                     # (C, 3C)
    wproj = w[:, 3 * Cv:4 * Cv]                               # (C, C)
    bqkv = bias[:, 0:3 * Cv]                                  # (1, 3C)
    bproj = bias[:, 3 * Cv:4 * Cv]                            # (1, C)

    # Fused QKV projection: one MXU push (scale already folded into Wq/bq).
    qkv = jnp.dot(x, wqkv, preferred_element_type=jnp.float32) + bqkv   # (B*T, 3C)

    # ---- Phase 1: all B*H score matmuls back-to-back, sublane-stacked ----
    scores = []
    for b in range(Bv):
        r0 = b * Tv
        for h in range(H):
            c0 = h * D
            qh = qkv[r0:r0 + Tv, c0:c0 + D]                   # (T, D)
            kh = qkv[r0:r0 + Tv, Cv + c0:Cv + c0 + D]         # (T, D)
            scores.append(jax.lax.dot_general(                # q @ k.T
                qh, kh, (((1,), (1,)), ((), ())),
                preferred_element_type=jnp.float32))          # (T, T)
    s = jnp.concatenate(scores, axis=0) + amask               # (B*H*T, T)

    # ---- Phase 2: ONE batched masked softmax (single max/exp/sum/recip) ----
    s = s - jnp.max(s, axis=-1, keepdims=True)
    p = jnp.exp(s)
    p = p * pl.reciprocal(jnp.sum(p, axis=-1, keepdims=True), approx=False)

    # ---- Phase 3: all B*H P@V matmuls back-to-back into the scratch slab ----
    for b in range(Bv):
        r0 = b * Tv
        for h in range(H):
            c0 = h * D
            s0 = (b * H + h) * Tv
            ph = p[s0:s0 + Tv, :]                                   # (T, T)
            vh = qkv[r0:r0 + Tv, 2 * Cv + c0:2 * Cv + c0 + D]       # (T, D)
            y_ref[r0:r0 + Tv, c0:c0 + D] = jnp.dot(
                ph, vh, preferred_element_type=jnp.float32)

    # Output projection on the whole (B*T, C) slab + bias; single full store.
    out = jnp.dot(y_ref[...], wproj, preferred_element_type=jnp.float32) + bproj
    o_ref[...] = out.astype(o_ref.dtype)


# --------------------- one-time parameter preparation ----------------------
def prepare_params(wq, bq, wk, bk, wv, bv, wp, bp, mask, *, n_head, batch):
    """Init-time fusion of all weights / biases / mask into one f32 slab.
    Nothing here runs in the per-call path."""
    Cv = wq.shape[0]
    Tv = mask.shape[0]
    D = Cv // n_head
    scale = jnp.float32(1.0 / math.sqrt(D))

    wqkv_t = jnp.concatenate([wq * scale, wk, wv], axis=0).T          # (C, 3C)
    w_slab = jnp.concatenate([wqkv_t, wp.T], axis=1)                  # (C, 4C)
    bias_row = jnp.concatenate([bq * scale, bk, bv, bp])[None, :]     # (1, 4C)

    # Additive mask (0 keep / -1e9 masked), pre-tiled over batch*heads so the
    # kernel adds it to the stacked score slab with a single VPU add.
    # (batch*n_head*T is a multiple of 8 here, keeping weight rows 8-aligned.)
    amask = jnp.where(mask == 0.0, jnp.float32(-1e9), jnp.float32(0.0))
    amask = jnp.tile(amask, (batch * n_head, 1))                      # (B*H*T, T)
    amask = jnp.pad(amask, ((0, 0), (0, 4 * Cv - Tv)))                # (B*H*T, 4C)

    params = jnp.concatenate([amask, w_slab, bias_row], axis=0)       # (B*H*T+C+1, 4C)
    return jax.device_put(params.astype(jnp.float32))


# ------------------------------ call builder -------------------------------
def make_causal_self_attention(*, batch, seq, n_embd, n_head):
    assert n_embd % n_head == 0
    kernel = functools.partial(causal_attn_kernel, batch=batch, seq=seq,
                               n_embd=n_embd, n_head=n_head)
    vmem = lambda: pl.BlockSpec(memory_space=pltpu.MemorySpace.VMEM)
    call = pl.pallas_call(
        kernel,
        out_shape=jax.ShapeDtypeStruct((batch * seq, n_embd), jnp.float32),
        in_specs=[vmem(), vmem()],
        out_specs=vmem(),
        scratch_shapes=[pltpu.VMEM((batch * seq, n_embd), jnp.float32)],
    )

    @jax.jit
    def forward(x, params):
        # reshapes are metadata-only; the per-call graph is just the pallas_call.
        out = call(x.reshape(batch * seq, n_embd), params)
        return out.reshape(batch, seq, n_embd)

    return forward


# ------------------------ pure-JAX reference ------------------------------
def reference(x, wq, bq, wk, bk, wv, bv, wp, bp, mask, n_head):
    Bv, Tv, Cv = x.shape
    D = Cv // n_head
    with jax.default_matmul_precision("highest"):
        q = x @ wq.T + bq
        k = x @ wk.T + bk
        v = x @ wv.T + bv
        q = q.reshape(Bv, Tv, n_head, D).transpose(0, 2, 1, 3)
        k = k.reshape(Bv, Tv, n_head, D).transpose(0, 2, 1, 3)
        v = v.reshape(Bv, Tv, n_head, D).transpose(0, 2, 1, 3)
        att = jnp.einsum('bhtd,bhsd->bhts', q, k) / math.sqrt(D)
        att = jnp.where(mask[None, None, :, :] == 0.0, -jnp.inf, att)
        att = jax.nn.softmax(att, axis=-1)
        y = jnp.einsum('bhts,bhsd->bhtd', att, v)
        y = y.transpose(0, 2, 1, 3).reshape(Bv, Tv, Cv)
        return y @ wp.T + bp


# -------------------------------- main -------------------------------------
if __name__ == "__main__":
    key = jax.random.PRNGKey(0)
    ks = jax.random.split(key, 9)

    scale = 1.0 / math.sqrt(C)
    x = jax.random.normal(ks[0], (B, T, C), dtype=jnp.float32)
    wq = jax.random.uniform(ks[1], (C, C), jnp.float32, -scale, scale)
    bq = jax.random.uniform(ks[2], (C,), jnp.float32, -scale, scale)
    wk = jax.random.uniform(ks[3], (C, C), jnp.float32, -scale, scale)
    bk = jax.random.uniform(ks[4], (C,), jnp.float32, -scale, scale)
    wv = jax.random.uniform(ks[5], (C, C), jnp.float32, -scale, scale)
    bv = jax.random.uniform(ks[6], (C,), jnp.float32, -scale, scale)
    wp = jax.random.uniform(ks[7], (C, C), jnp.float32, -scale, scale)
    bp = jax.random.uniform(ks[8], (C,), jnp.float32, -scale, scale)

    # causal mask with "reward / terminal" columns zeroed, exactly as the buffer:
    #   mask = tril(ones(block_size, block_size)); mask[:, joined_dim-1::joined_dim] = 0
    full_mask = np.tril(np.ones((BLOCK_SIZE, BLOCK_SIZE), dtype=np.float32))
    full_mask[:, JOINED_DIM - 1::JOINED_DIM] = 0.0
    mask = jnp.asarray(full_mask[:T, :T])

    # ---- init-time (hoisted) preparation: runs ONCE, not in the call path ----
    params = prepare_params(wq, bq, wk, bk, wv, bv, wp, bp, mask,
                            n_head=N_HEAD, batch=B)
    attn = make_causal_self_attention(batch=B, seq=T, n_embd=C, n_head=N_HEAD)

    out = jax.block_until_ready(attn(x, params))

    ref = reference(x, wq, bq, wk, bk, wv, bv, wp, bp, mask, N_HEAD)
    np.testing.assert_allclose(np.asarray(out), np.asarray(ref),
                               rtol=2e-3, atol=2e-3)

    print("KERNEL_OK")
</pallas_src>

<mosaic_0001>
module attributes {stable_mosaic.version = 11 : i64} {
  func.func @causal_attn_kernel(%arg0: memref<16x32xf32, #tpu.memory_space<vmem>>, %arg1: memref<97x128xf32, #tpu.memory_space<vmem>>, %arg2: memref<16x32xf32, #tpu.memory_space<vmem>>, %arg3: memref<16x32xf32, #tpu.memory_space<vmem>>) attributes {dimension_semantics = [], scalar_prefetch = 0 : i64, scratch_operands = 1 : i64, tpu.core_type = #tpu.core_type<tc>} {
    %c0 = arith.constant 0 : index
    %c0_0 = arith.constant 0 : index
    %0 = vector.load %arg0[%c0, %c0_0] : memref<16x32xf32, #tpu.memory_space<vmem>>, vector<16x32xf32>
    %c0_1 = arith.constant 0 : index
    %c0_2 = arith.constant 0 : index
    %1 = vector.load %arg1[%c0_1, %c0_2] : memref<97x128xf32, #tpu.memory_space<vmem>>, vector<64x8xf32>
    %c64 = arith.constant 64 : index
    %c0_3 = arith.constant 0 : index
    %2 = vector.load %arg1[%c64, %c0_3] : memref<97x128xf32, #tpu.memory_space<vmem>>, vector<32x128xf32>
    %c96 = arith.constant 96 : index
    %c0_4 = arith.constant 0 : index
    %3 = vector.load %arg1[%c96, %c0_4] : memref<97x128xf32, #tpu.memory_space<vmem>>, vector<1x128xf32>
    %4 = vector.extract_strided_slice %2 {offsets = [0, 0], sizes = [32, 96], strides = [1, 1]} : vector<32x128xf32> to vector<32x96xf32>
    %5 = vector.extract_strided_slice %2 {offsets = [0, 96], sizes = [32, 32], strides = [1, 1]} : vector<32x128xf32> to vector<32x32xf32>
    %6 = vector.extract_strided_slice %3 {offsets = [0, 0], sizes = [1, 96], strides = [1, 1]} : vector<1x128xf32> to vector<1x96xf32>
    %7 = vector.extract_strided_slice %3 {offsets = [0, 96], sizes = [1, 32], strides = [1, 1]} : vector<1x128xf32> to vector<1x32xf32>
    %cst = arith.constant dense<0.000000e+00> : vector<16x96xf32>
    %8 = tpu.matmul %0, %4, %cst {dimension_numbers = #tpu.dot_dimension_numbers<[1], [0], [0], [1], [0, 0, 1, 1], [], []>} : vector<16x32xf32>, vector<32x96xf32>, vector<16x96xf32> -> vector<16x96xf32>
    %9 = vector.broadcast %6 : vector<1x96xf32> to vector<16x96xf32>
    %10 = arith.addf %8, %9 : vector<16x96xf32>
    %11 = vector.extract_strided_slice %10 {offsets = [0, 0], sizes = [8, 8], strides = [1, 1]} : vector<16x96xf32> to vector<8x8xf32>
    %12 = vector.extract_strided_slice %10 {offsets = [0, 32], sizes = [8, 8], strides = [1, 1]} : vector<16x96xf32> to vector<8x8xf32>
    %cst_5 = arith.constant dense<0.000000e+00> : vector<8x8xf32>
    %13 = tpu.matmul %11, %12, %cst_5 {dimension_numbers = #tpu.dot_dimension_numbers<[1], [1], [0], [0], [0, 0, 1, 0], [], []>} : vector<8x8xf32>, vector<8x8xf32>, vector<8x8xf32> -> vector<8x8xf32>
    %14 = vector.extract_strided_slice %10 {offsets = [0, 8], sizes = [8, 8], strides = [1, 1]} : vector<16x96xf32> to vector<8x8xf32>
    %15 = vector.extract_strided_slice %10 {offsets = [0, 40], sizes = [8, 8], strides = [1, 1]} : vector<16x96xf32> to vector<8x8xf32>
    %cst_6 = arith.constant dense<0.000000e+00> : vector<8x8xf32>
    %16 = tpu.matmul %14, %15, %cst_6 {dimension_numbers = #tpu.dot_dimension_numbers<[1], [1], [0], [0], [0, 0, 1, 0], [], []>} : vector<8x8xf32>, vector<8x8xf32>, vector<8x8xf32> -> vector<8x8xf32>
    %17 = vector.extract_strided_slice %10 {offsets = [0, 16], sizes = [8, 8], strides = [1, 1]} : vector<16x96xf32> to vector<8x8xf32>
    %18 = vector.extract_strided_slice %10 {offsets = [0, 48], sizes = [8, 8], strides = [1, 1]} : vector<16x96xf32> to vector<8x8xf32>
    %cst_7 = arith.constant dense<0.000000e+00> : vector<8x8xf32>
    %19 = tpu.matmul %17, %18, %cst_7 {dimension_numbers = #tpu.dot_dimension_numbers<[1], [1], [0], [0], [0, 0, 1, 0], [], []>} : vector<8x8xf32>, vector<8x8xf32>, vector<8x8xf32> -> vector<8x8xf32>
    %20 = vector.extract_strided_slice %10 {offsets = [0, 24], sizes = [8, 8], strides = [1, 1]} : vector<16x96xf32> to vector<8x8xf32>
    %21 = vector.extract_strided_slice %10 {offsets = [0, 56], sizes = [8, 8], strides = [1, 1]} : vector<16x96xf32> to vector<8x8xf32>
    %cst_8 = arith.constant dense<0.000000e+00> : vector<8x8xf32>
    %22 = tpu.matmul %20, %21, %cst_8 {dimension_numbers = #tpu.dot_dimension_numbers<[1], [1], [0], [0], [0, 0, 1, 0], [], []>} : vector<8x8xf32>, vector<8x8xf32>, vector<8x8xf32> -> vector<8x8xf32>
    %23 = vector.extract_strided_slice %10 {offsets = [8, 0], sizes = [8, 8], strides = [1, 1]} : vector<16x96xf32> to vector<8x8xf32>
    %24 = vector.extract_strided_slice %10 {offsets = [8, 32], sizes = [8, 8], strides = [1, 1]} : vector<16x96xf32> to vector<8x8xf32>
    %cst_9 = arith.constant dense<0.000000e+00> : vector<8x8xf32>
    %25 = tpu.matmul %23, %24, %cst_9 {dimension_numbers = #tpu.dot_dimension_numbers<[1], [1], [0], [0], [0, 0, 1, 0], [], []>} : vector<8x8xf32>, vector<8x8xf32>, vector<8x8xf32> -> vector<8x8xf32>
    %26 = vector.extract_strided_slice %10 {offsets = [8, 8], sizes = [8, 8], strides = [1, 1]} : vector<16x96xf32> to vector<8x8xf32>
    %27 = vector.extract_strided_slice %10 {offsets = [8, 40], sizes = [8, 8], strides = [1, 1]} : vector<16x96xf32> to vector<8x8xf32>
    %cst_10 = arith.constant dense<0.000000e+00> : vector<8x8xf32>
    %28 = tpu.matmul %26, %27, %cst_10 {dimension_numbers = #tpu.dot_dimension_numbers<[1], [1], [0], [0], [0, 0, 1, 0], [], []>} : vector<8x8xf32>, vector<8x8xf32>, vector<8x8xf32> -> vector<8x8xf32>
    %29 = vector.extract_strided_slice %10 {offsets = [8, 16], sizes = [8, 8], strides = [1, 1]} : vector<16x96xf32> to vector<8x8xf32>
    %30 = vector.extract_strided_slice %10 {offsets = [8, 48], sizes = [8, 8], strides = [1, 1]} : vector<16x96xf32> to vector<8x8xf32>
    %cst_11 = arith.constant dense<0.000000e+00> : vector<8x8xf32>
    %31 = tpu.matmul %29, %30, %cst_11 {dimension_numbers = #tpu.dot_dimension_numbers<[1], [1], [0], [0], [0, 0, 1, 0], [], []>} : vector<8x8xf32>, vector<8x8xf32>, vector<8x8xf32> -> vector<8x8xf32>
    %32 = vector.extract_strided_slice %10 {offsets = [8, 24], sizes = [8, 8], strides = [1, 1]} : vector<16x96xf32> to vector<8x8xf32>
    %33 = vector.extract_strided_slice %10 {offsets = [8, 56], sizes = [8, 8], strides = [1, 1]} : vector<16x96xf32> to vector<8x8xf32>
    %cst_12 = arith.constant dense<0.000000e+00> : vector<8x8xf32>
    %34 = tpu.matmul %32, %33, %cst_12 {dimension_numbers = #tpu.dot_dimension_numbers<[1], [1], [0], [0], [0, 0, 1, 0], [], []>} : vector<8x8xf32>, vector<8x8xf32>, vector<8x8xf32> -> vector<8x8xf32>
    %35 = tpu.concatenate %13, %16, %19, %22, %25, %28, %31, %34 in 0 : vector<8x8xf32>, vector<8x8xf32>, vector<8x8xf32>, vector<8x8xf32>, vector<8x8xf32>, vector<8x8xf32>, vector<8x8xf32>, vector<8x8xf32> -> vector<64x8xf32>
    %36 = arith.addf %35, %1 : vector<64x8xf32>
    %cst_13 = arith.constant dense<0xFF800000> : vector<64xf32>
    %37 = vector.multi_reduction <maximumf>, %36, %cst_13 [1] : vector<64x8xf32> to vector<64xf32>
    %38 = vector.shape_cast %37 : vector<64xf32> to vector<64x1xf32>
    %39 = vector.broadcast %38 : vector<64x1xf32> to vector<64x8xf32>
    %40 = arith.subf %36, %39 : vector<64x8xf32>
    %41 = math.exp %40 : vector<64x8xf32>
    %cst_14 = arith.constant dense<0.000000e+00> : vector<64xf32>
    %42 = vector.multi_reduction <add>, %41, %cst_14 [1] : vector<64x8xf32> to vector<64xf32>
    %43 = vector.shape_cast %42 : vector<64xf32> to vector<64x1xf32>
    %44 = tpu.reciprocal %43 : vector<64x1xf32> -> vector<64x1xf32>
    %45 = vector.broadcast %44 : vector<64x1xf32> to vector<64x8xf32>
    %46 = arith.mulf %41, %45 : vector<64x8xf32>
    %47 = vector.extract_strided_slice %46 {offsets = [0, 0], sizes = [8, 8], strides = [1, 1]} : vector<64x8xf32> to vector<8x8xf32>
    %48 = vector.extract_strided_slice %10 {offsets = [0, 64], sizes = [8, 8], strides = [1, 1]} : vector<16x96xf32> to vector<8x8xf32>
    %cst_15 = arith.constant dense<0.000000e+00> : vector<8x8xf32>
    %49 = tpu.matmul %47, %48, %cst_15 {dimension_numbers = #tpu.dot_dimension_numbers<[1], [0], [0], [1], [0, 0, 1, 1], [], []>} : vector<8x8xf32>, vector<8x8xf32>, vector<8x8xf32> -> vector<8x8xf32>
    %c0_16 = arith.constant 0 : index
    %c0_17 = arith.constant 0 : index
    %50 = vector.load %arg3[%c0_16, %c0_17] : memref<16x32xf32, #tpu.memory_space<vmem>>, vector<8x8xf32>
    tpu.vector_store %arg3[%c0_16, %c0_17], %49 {strides = array<i32>} : memref<16x32xf32, #tpu.memory_space<vmem>>, vector<8x8xf32>,
    %51 = vector.extract_strided_slice %46 {offsets = [8, 0], sizes = [8, 8], strides = [1, 1]} : vector<64x8xf32> to vector<8x8xf32>
    %52 = vector.extract_strided_slice %10 {offsets = [0, 72], sizes = [8, 8], strides = [1, 1]} : vector<16x96xf32> to vector<8x8xf32>
    %cst_18 = arith.constant dense<0.000000e+00> : vector<8x8xf32>
    %53 = tpu.matmul %51, %52, %cst_18 {dimension_numbers = #tpu.dot_dimension_numbers<[1], [0], [0], [1], [0, 0, 1, 1], [], []>} : vector<8x8xf32>, vector<8x8xf32>, vector<8x8xf32> -> vector<8x8xf32>
    %c0_19 = arith.constant 0 : index
    %c8 = arith.constant 8 : index
    %54 = vector.load %arg3[%c0_19, %c8] : memref<16x32xf32, #tpu.memory_space<vmem>>, vector<8x8xf32>
    tpu.vector_store %arg3[%c0_19, %c8], %53 {strides = array<i32>} : memref<16x32xf32, #tpu.memory_space<vmem>>, vector<8x8xf32>,
    %55 = vector.extract_strided_slice %46 {offsets = [16, 0], sizes = [8, 8], strides = [1, 1]} : vector<64x8xf32> to vector<8x8xf32>
    %56 = vector.extract_strided_slice %10 {offsets = [0, 80], sizes = [8, 8], strides = [1, 1]} : vector<16x96xf32> to vector<8x8xf32>
    %cst_20 = arith.constant dense<0.000000e+00> : vector<8x8xf32>
    %57 = tpu.matmul %55, %56, %cst_20 {dimension_numbers = #tpu.dot_dimension_numbers<[1], [0], [0], [1], [0, 0, 1, 1], [], []>} : vector<8x8xf32>, vector<8x8xf32>, vector<8x8xf32> -> vector<8x8xf32>
    %c0_21 = arith.constant 0 : index
    %c16 = arith.constant 16 : index
    %58 = vector.load %arg3[%c0_21, %c16] : memref<16x32xf32, #tpu.memory_space<vmem>>, vector<8x8xf32>
    tpu.vector_store %arg3[%c0_21, %c16], %57 {strides = array<i32>} : memref<16x32xf32, #tpu.memory_space<vmem>>, vector<8x8xf32>,
    %59 = vector.extract_strided_slice %46 {offsets = [24, 0], sizes = [8, 8], strides = [1, 1]} : vector<64x8xf32> to vector<8x8xf32>
    %60 = vector.extract_strided_slice %10 {offsets = [0, 88], sizes = [8, 8], strides = [1, 1]} : vector<16x96xf32> to vector<8x8xf32>
    %cst_22 = arith.constant dense<0.000000e+00> : vector<8x8xf32>
    %61 = tpu.matmul %59, %60, %cst_22 {dimension_numbers = #tpu.dot_dimension_numbers<[1], [0], [0], [1], [0, 0, 1, 1], [], []>} : vector<8x8xf32>, vector<8x8xf32>, vector<8x8xf32> -> vector<8x8xf32>
    %c0_23 = arith.constant 0 : index
    %c24 = arith.constant 24 : index
    %62 = vector.load %arg3[%c0_23, %c24] : memref<16x32xf32, #tpu.memory_space<vmem>>, vector<8x8xf32>
    tpu.vector_store %arg3[%c0_23, %c24], %61 {strides = array<i32>} : memref<16x32xf32, #tpu.memory_space<vmem>>, vector<8x8xf32>,
    %63 = vector.extract_strided_slice %46 {offsets = [32, 0], sizes = [8, 8], strides = [1, 1]} : vector<64x8xf32> to vector<8x8xf32>
    %64 = vector.extract_strided_slice %10 {offsets = [8, 64], sizes = [8, 8], strides = [1, 1]} : vector<16x96xf32> to vector<8x8xf32>
    %cst_24 = arith.constant dense<0.000000e+00> : vector<8x8xf32>
    %65 = tpu.matmul %63, %64, %cst_24 {dimension_numbers = #tpu.dot_dimension_numbers<[1], [0], [0], [1], [0, 0, 1, 1], [], []>} : vector<8x8xf32>, vector<8x8xf32>, vector<8x8xf32> -> vector<8x8xf32>
    %c8_25 = arith.constant 8 : index
    %c0_26 = arith.constant 0 : index
    %66 = vector.load %arg3[%c8_25, %c0_26] : memref<16x32xf32, #tpu.memory_space<vmem>>, vector<8x8xf32>
    tpu.vector_store %arg3[%c8_25, %c0_26], %65 {strides = array<i32>} : memref<16x32xf32, #tpu.memory_space<vmem>>, vector<8x8xf32>,
    %67 = vector.extract_strided_slice %46 {offsets = [40, 0], sizes = [8, 8], strides = [1, 1]} : vector<64x8xf32> to vector<8x8xf32>
    %68 = vector.extract_strided_slice %10 {offsets = [8, 72], sizes = [8, 8], strides = [1, 1]} : vector<16x96xf32> to vector<8x8xf32>
    %cst_27 = arith.constant dense<0.000000e+00> : vector<8x8xf32>
    %69 = tpu.matmul %67, %68, %cst_27 {dimension_numbers = #tpu.dot_dimension_numbers<[1], [0], [0], [1], [0, 0, 1, 1], [], []>} : vector<8x8xf32>, vector<8x8xf32>, vector<8x8xf32> -> vector<8x8xf32>
    %c8_28 = arith.constant 8 : index
    %c8_29 = arith.constant 8 : index
    %70 = vector.load %arg3[%c8_28, %c8_29] : memref<16x32xf32, #tpu.memory_space<vmem>>, vector<8x8xf32>
    tpu.vector_store %arg3[%c8_28, %c8_29], %69 {strides = array<i32>} : memref<16x32xf32, #tpu.memory_space<vmem>>, vector<8x8xf32>,
    %71 = vector.extract_strided_slice %46 {offsets = [48, 0], sizes = [8, 8], strides = [1, 1]} : vector<64x8xf32> to vector<8x8xf32>
    %72 = vector.extract_strided_slice %10 {offsets = [8, 80], sizes = [8, 8], strides = [1, 1]} : vector<16x96xf32> to vector<8x8xf32>
    %cst_30 = arith.constant dense<0.000000e+00> : vector<8x8xf32>
    %73 = tpu.matmul %71, %72, %cst_30 {dimension_numbers = #tpu.dot_dimension_numbers<[1], [0], [0], [1], [0, 0, 1, 1], [], []>} : vector<8x8xf32>, vector<8x8xf32>, vector<8x8xf32> -> vector<8x8xf32>
    %c8_31 = arith.constant 8 : index
    %c16_32 = arith.constant 16 : index
    %74 = vector.load %arg3[%c8_31, %c16_32] : memref<16x32xf32, #tpu.memory_space<vmem>>, vector<8x8xf32>
    tpu.vector_store %arg3[%c8_31, %c16_32], %73 {strides = array<i32>} : memref<16x32xf32, #tpu.memory_space<vmem>>, vector<8x8xf32>,
    %75 = vector.extract_strided_slice %46 {offsets = [56, 0], sizes = [8, 8], strides = [1, 1]} : vector<64x8xf32> to vector<8x8xf32>
    %76 = vector.extract_strided_slice %10 {offsets = [8, 88], sizes = [8, 8], strides = [1, 1]} : vector<16x96xf32> to vector<8x8xf32>
    %cst_33 = arith.constant dense<0.000000e+00> : vector<8x8xf32>
    %77 = tpu.matmul %75, %76, %cst_33 {dimension_numbers = #tpu.dot_dimension_numbers<[1], [0], [0], [1], [0, 0, 1, 1], [], []>} : vector<8x8xf32>, vector<8x8xf32>, vector<8x8xf32> -> vector<8x8xf32>
    %c8_34 = arith.constant 8 : index
    %c24_35 = arith.constant 24 : index
    %78 = vector.load %arg3[%c8_34, %c24_35] : memref<16x32xf32, #tpu.memory_space<vmem>>, vector<8x8xf32>
    tpu.vector_store %arg3[%c8_34, %c24_35], %77 {strides = array<i32>} : memref<16x32xf32, #tpu.memory_space<vmem>>, vector<8x8xf32>,
    %c0_36 = arith.constant 0 : index
    %c0_37 = arith.constant 0 : index
    %79 = vector.load %arg3[%c0_36, %c0_37] : memref<16x32xf32, #tpu.memory_space<vmem>>, vector<16x32xf32>
    %cst_38 = arith.constant dense<0.000000e+00> : vector<16x32xf32>
    %80 = tpu.matmul %79, %5, %cst_38 {dimension_numbers = #tpu.dot_dimension_numbers<[1], [0], [0], [1], [0, 0, 1, 1], [], []>} : vector<16x32xf32>, vector<32x32xf32>, vector<16x32xf32> -> vector<16x32xf32>
    %81 = vector.broadcast %7 : vector<1x32xf32> to vector<16x32xf32>
    %82 = arith.addf %80, %81 : vector<16x32xf32>
    %c0_39 = arith.constant 0 : index
    %c0_40 = arith.constant 0 : index
    %83 = vector.load %arg2[%c0_39, %c0_40] : memref<16x32xf32, #tpu.memory_space<vmem>>, vector<16x32xf32>
    tpu.vector_store %arg2[%c0_39, %c0_40], %82 {strides = array<i32>} : memref<16x32xf32, #tpu.memory_space<vmem>>, vector<16x32xf32>,
    return
  }
}

</mosaic_0001>

<bundles_post_ra>
// kernel: forward.1
= control target key start
LH: loop header
LB: loop body
LE: loop exit
PB: predicated region body
PF: predicated region fallthrough
CT: control target
= control target key end

     0   :  { %7 = vsyncpa [#allocation4], 0  ;;  %s1260_s0 = inlined_call_operand.hbm [shape: f32[16,32], index: 0, kind: input, shape index: {}]   ;;  %s1261_s1 = inlined_call_operand.hbm [shape: f32[97,128], index: 1, kind: input, shape index: {}]   ;;  %s1262_s2 = inlined_call_operand.hbm [shape: f32[16,32], index: 2, kind: output, shape index: {}]  }
   0x1   :  { %8 = vsyncpa [#allocation7], 0 }
   0x2   :  { %9 = vsyncpa [#allocation5], 0  ;;  %s14_s11 = sshll.u32 %s1260_s0, 4  ;;  %s1012_s12 = smov [#allocation3]   ;;  %s15_s11 = int_to_ptr.hbm [resolvable:$true] %s14_s11 }
   0x3   :  { %s16_s13 = sshll.u32 %s1012_s12, 4  ;;  %s27_s16 = sshll.u32 %s1261_s1, 4  ;;  %s17_s13 = int_to_ptr.vmem [resolvable:$true] %s16_s13  ;;  %s28_s16 = int_to_ptr.hbm [resolvable:$true] %s27_s16 }
   0x4   :  { %s1013_s17 = smov 128   ;;  %s1014_s18 = smov 8  }
   0x5   :  { %22 = dma.hbm_to_vmem [thread:$0]  %s15_s11, 256, %s17_s13, [#allocation4], %s1013_s17, %s1013_s17, %s1014_s18  }
   0x6   :  { %s1015_s19 = smov [#allocation6]  }
   0x7   :  { %s29_s20 = sshll.u32 %s1015_s19, 4  ;;  %s30_s20 = int_to_ptr.vmem [resolvable:$true] %s29_s20 }
   0x8   :  { %35 = dma.hbm_to_vmem [thread:$0]  %s28_s16, 1664, %s30_s20, [#allocation7], %s1013_s17, %s1013_s17, %s1014_s18  }
   0x9   :  { %1006 = dma.done.wait [#allocation4], 256  }
   0xa   :  { %1007 = vsyncadd [#allocation4], 4294967040 }
   0xb   :  { %1008 = dma.done.wait [#allocation7], 1664  }
   0xc   :  { %1009 = vsyncadd [#allocation7], 4294965632  ;;  %v1058_v0 = vld [vmem:[#allocation6 + $0x58] sm:$0xff]  ;;  %v1060_v1 = vld [vmem:[#allocation6 + $0x50] sm:$0xff]  ;;  %vm60_vm0 = vcmask 261120   ;;  %s1016_s0 = smov 72  }
   0xd   :  { %79 = vmatpush.msra.mxu0 %v1058_v0  ;;  %v891_v2 = vpack.i.bf16 %v1060_v1, %v1058_v0  ;;  %v1065_v3 = vld [vmem:[#allocation6 + $0x48] sm:$0xff]  ;;  %v1067_v4 = vld [vmem:[#allocation6 + $0x40] sm:$0xff]  ;;  %v44_v6 = vld [vmem:[#allocation3] sm:$0xff]  ;;  %s1017_s1 = smov 96   ;;  %s1018_s21 = smov 88   ;;  %vm93_vm1 = vcmask 64512  }
   0xe   :  { %v896_v5 = vpack.i.bf16 %v1067_v4, %v1065_v3  ;;  %v45_v7 = vld [vmem:[#allocation3 + $0x8] sm:$0xff]  ;;  %v1076_v8 = vld [vmem:[#allocation6 + $0x60] ss:$0 sm:$0xff]  ;;  %s1019_s22 = smov 120   ;;  %s1020_s23 = smov 104   ;;  %v47_v28 = vld [vmem:[#allocation6 + $0x8] sm:$0xff] }
   0xf   :  { %80 = vmatpush.msra.mxu0 %v1060_v1  ;;  %s1021_s24 = smov 80   ;;  %s1022_s25 = smov 112   ;;  %v49_v30 = vld [vmem:[#allocation6 + $0x18] sm:$0xff]  ;;  %v48_v36 = vld [vmem:[#allocation6 + $0x10] sm:$0xff]  ;;  %v46_v41 = vld [vmem:[#allocation6] sm:$0xff] }
  0x10   :  { %v53_v42 = vld [vmem:[#allocation6 + $0x38] sm:$0xff]  ;;  %v52_v47 = vld [vmem:[#allocation6 + $0x30] sm:$0xff]  ;;  %v51_v48 = vld [vmem:[#allocation6 + $0x28] sm:$0xff]  ;;  %s1023_s26 = smov 40   ;;  %s1024_s27 = smov 48  }
  0x11   :  { %81 = vmatpush.msra.mxu0 %v1065_v3  ;;  %v50_v56 = vld [vmem:[#allocation6 + $0x20] sm:$0xff]  ;;  %s1025_s28 = smov 56   ;;  %s1026_s29 = smov 64  }
  0x12   :  { %s1027_s30 = smov 32   ;;  %s1028_s3 = smov 16  }
  0x13   :  { %82 = vmatpush.msra.mxu0 %v1067_v4  ;;  %s1029_s4 = smov 24   ;;  %s1030_s5 = smov [#allocation8]  }
  0x14   :  { %829 = vmatmul.msk.f32.vlgmr.msra.gmra.mxu0 %vm60_vm0, %v44_v6  ;;  %s813_s6 = sshll.u32 %s1030_s5, 4  ;;  %s815_s9 = sshll.u32 %s1262_s2, 4  ;;  %s814_s6 = int_to_ptr.vmem [resolvable:$true] %s813_s6  ;;  %s816_s9 = int_to_ptr.hbm [resolvable:$true] %s815_s9 }
  0x1c   :  { %830 = vmatmul.msk.f32.gmra.mxu0 %vm60_vm0, %v45_v7 }
  0x91   :  { %v84_v9 = vpop.f32.mrf.mxu0 }
  0x92   :  { %v1079_v10 = vadd.f32 %v1076_v8, %v84_v9 }
  0x94   :  { %176 = vrot.lane.b32.xlu2 %v1079_v10, %s1016_s0  ;;  %91 = vrot.lane.b32.xlu1 %v1079_v10, %s1017_s1 }
  0x95   :  { %120 = vrot.lane.b32.xlu0 %v1079_v10, %s1018_s21 }
  0x99   :  { %v87_v11 = vpop.f32.mrf.mxu0 }
  0x9a   :  { %v1085_v12 = vadd.f32 %v1076_v8, %v87_v11 }
  0x9c   :  { %287 = vrot.lane.b32.xlu2 %v1085_v12, %s1016_s0  ;;  %203 = vrot.lane.b32.xlu1 %v1085_v12, %s1017_s1 }
  0x9d   :  { %118 = vrot.lane.b32.xlu0 %v1079_v10, %s1019_s22 }
  0xa4   :  { %285 = vrot.lane.b32.xlu2 %v1085_v12, %s1020_s23  ;;  %148 = vrot.lane.b32.xlu1 %v1079_v10, %s1021_s24 }
  0xa5   :  { %174 = vrot.lane.b32.xlu0 %v1079_v10, %s1020_s23 }
  0xac   :  { %229 = vrot.lane.b32.xlu2 %v1085_v12, %s1019_s22  ;;  %146 = vrot.lane.b32.xlu1 %v1079_v10, %s1022_s25 }
  0xad   :  { %231 = vrot.lane.b32.xlu0 %v1085_v12, %s1018_s21 }
  0xb4   :  { %257 = vrot.lane.b32.xlu1 %v1085_v12, %s1022_s25 }
  0xb5   :  { %259 = vrot.lane.b32.xlu0 %v1085_v12, %s1021_s24 }
  0xee   :  { %v177_v13 = vpop.permute.xlu2 %176 }
  0xf6   :  { %v288_v16 = vpop.permute.xlu2 %287 }
  0xfe   :  { %v286_v21 = vpop.permute.xlu2 %285 }
 0x106   :  { %v92_v14 = vpop.permute.xlu1 %91  ;;  %v230_v24 = vpop.permute.xlu2 %229 }
 0x107   :  { %v121_v15 = vpop.permute.xlu0 %120  ;;  %831 = vmatpush.xpose.msk.msra.mxu1 %vm93_vm1, %v92_v14 }
 0x108   :  { %833 = vmatpush.xpose.msk.msra.mxu2 %vm93_vm1, %v121_v15 }
 0x10a   :  { %832 = vmatmul.msk.f32.vlgmr.msra.gmra.mxu1 %vm93_vm1, %v1079_v10 }
 0x10b   :  { %837 = vmatpush.xpose.msk.msrb.mxu1 %vm93_vm1, %v177_v13 }
 0x10e   :  { %v204_v17 = vpop.permute.xlu1 %203 }
 0x10f   :  { %v119_v18 = vpop.permute.xlu0 %118  ;;  %839 = vmatpush.xpose.msk.msrb.mxu2 %vm93_vm1, %v204_v17 }
 0x110   :  { %834 = vmatmul.msk.f32.vlgmr.msra.gmra.mxu2 %vm93_vm1, %v119_v18 }
 0x113   :  { %845 = vmatpush.xpose.msk.msra.mxu2 %vm93_vm1, %v288_v16 }
 0x116   :  { %v149_v19 = vpop.permute.xlu1 %148 }
 0x117   :  { %v175_v20 = vpop.permute.xlu0 %174  ;;  %835 = vmatpush.xpose.msk.msrb.mxu0 %vm93_vm1, %v149_v19 }
 0x118   :  { %838 = vmatmul.msk.f32.vlgmr.msrb.gmra.mxu1 %vm93_vm1, %v175_v20  ;;  %840 = vmatmul.msk.f32.vlgmr.msrb.gmra.mxu2 %vm93_vm1, %v1085_v12 }
 0x11e   :  { %v147_v22 = vpop.permute.xlu1 %146 }
 0x11f   :  { %v232_v23 = vpop.permute.xlu0 %231  ;;  %836 = vmatmul.msk.f32.vlgmr.msrb.gmra.mxu0 %vm93_vm1, %v147_v22 }
 0x120   :  { %841 = vmatpush.xpose.msk.msra.mxu3 %vm93_vm1, %v232_v23  ;;  %846 = vmatmul.msk.f32.vlgmr.msra.gmra.mxu2 %vm93_vm1, %v286_v21 }
 0x123   :  { %842 = vmatmul.msk.f32.vlgmr.msra.gmra.mxu3 %vm93_vm1, %v230_v24 }
 0x126   :  { %v258_v26 = vpop.permute.xlu1 %257 }
 0x127   :  { %v260_v25 = vpop.permute.xlu0 %259 }
 0x128   :  { %843 = vmatpush.xpose.msk.msra.mxu1 %vm93_vm1, %v260_v25 }
 0x12b   :  { %844 = vmatmul.msk.f32.vlgmr.msra.gmra.mxu1 %vm93_vm1, %v258_v26 }
 0x187   :  { %v115_v27 = vpop.f32.mrf.mxu1 }
 0x188   :  { %v1119_v43 = vadd.f32 %v115_v27, %v46_v41 }
 0x18a   :  { %v321_v50 = vsel %vm93_vm1, %v1119_v43, -inf }
 0x193   :  { %v143_v29 = vpop.f32.mrf.mxu2 }
 0x194   :  { %v314_v31 = vadd.f32 %v143_v29, %v47_v28 }
 0x195   :  { %v199_v32 = vpop.f32.mrf.mxu1 }
 0x196   :  { %v316_v33 = vadd.f32 %v199_v32, %v49_v30  ;;  %v324_v34 = vsel %vm93_vm1, %v314_v31, -inf }
 0x197   :  { %325 = vmax.xlane.f32.xlu0 %v324_v34  ;;  %v876_v34 = vpack.i.bf16 %v1085_v12, %v1079_v10 }
 0x198   :  { %v330_v35 = vsel %vm93_vm1, %v316_v33, -inf }
 0x199   :  { %331 = vmax.xlane.f32.xlu2 %v330_v35 }
 0x19b   :  { %v226_v37 = vpop.f32.mrf.mxu2 }
 0x19c   :  { %v171_v38 = vpop.f32.mrf.mxu0  ;;  %v317_v57 = vadd.f32 %v226_v37, %v50_v56 }
 0x19d   :  { %v315_v39 = vadd.f32 %v171_v38, %v48_v36 }
 0x19e   :  { %v333_v58 = vsel %vm93_vm1, %v317_v57, -inf }
 0x19f   :  { %v327_v40 = vsel %vm93_vm1, %v315_v39, -inf }
 0x1a0   :  { %328 = vmax.xlane.f32.xlu1 %v327_v40 }
 0x1a3   :  { %v310_v44 = vpop.f32.mrf.mxu2 }
 0x1a4   :  { %v320_v45 = vadd.f32 %v310_v44, %v53_v42 }
 0x1a6   :  { %v342_v46 = vsel %vm93_vm1, %v320_v45, -inf  ;;  %v254_v49 = vpop.f32.mrf.mxu3 }
 0x1a7   :  { %343 = vmax.xlane.f32.xlu2 %v342_v46  ;;  %v318_v53 = vadd.f32 %v254_v49, %v51_v48 }
 0x1a8   :  { %v282_v51 = vpop.f32.mrf.mxu1  ;;  %322 = vmax.xlane.f32.xlu1 %v321_v50 }
 0x1a9   :  { %v319_v52 = vadd.f32 %v282_v51, %v52_v47  ;;  %v336_v55 = vsel %vm93_vm1, %v318_v53, -inf }
 0x1ab   :  { %v339_v54 = vsel %vm93_vm1, %v319_v52, -inf }
 0x1ac   :  { %340 = vmax.xlane.f32.xlu0 %v339_v54 }
 0x1af   :  { %337 = vmax.xlane.f32.xlu2 %v336_v55 }
 0x1b7   :  { %334 = vmax.xlane.f32.xlu2 %v333_v58 }
 0x20a   :  { %v326_v59 = vpop.xlane.xlu0 %325 }
 0x20b   :  { %v346_v60 = vsub.f32 %v314_v31, %v326_v59 }
 0x20c   :  { %v332_v61 = vpop.xlane.xlu2 %331 }
 0x20d   :  { %v355_v62 = vmul.f32 1.442695, %v346_v60  ;;  %v348_v63 = vsub.f32 %v316_v33, %v332_v61 }
 0x20f   :  { %902 = vpow2.f32 %v355_v62  ;;  %v359_v6 = vmul.f32 1.442695, %v348_v63 }
 0x211   :  { %904 = vpow2.f32 %v359_v6 }
 0x213   :  { %v329_v7 = vpop.xlane.xlu1 %328 }
 0x214   :  { %v347_v9 = vsub.f32 %v315_v39, %v329_v7 }
 0x215   :  { %v1127_v11 = vpop.eup %902 }
 0x216   :  { %v357_v13 = vmul.f32 1.442695, %v347_v9  ;;  %v372_v14 = vsel %vm93_vm1, %v1127_v11, 0.0 }
 0x217   :  { %v1131_v15 = vpop.eup %904  ;;  %373 = vadd.xlane.f32.xlu1 %v372_v14 }
 0x218   :  { %906 = vpow2.f32 %v357_v13  ;;  %v378_v16 = vsel %vm93_vm1, %v1131_v15, 0.0 }
 0x219   :  { %379 = vadd.xlane.f32.xlu0 %v378_v16 }
 0x21a   :  { %v344_v17 = vpop.xlane.xlu2 %343 }
 0x21b   :  { %v352_v18 = vsub.f32 %v320_v45, %v344_v17  ;;  %v323_v35 = vpop.xlane.xlu1 %322 }
 0x21c   :  { %v345_v36 = vsub.f32 %v1119_v43, %v323_v35 }
 0x21d   :  { %v367_v19 = vmul.f32 1.442695, %v352_v18 }
 0x21e   :  { %v1135_v20 = vpop.eup %906  ;;  %v353_v37 = vmul.f32 1.442695, %v345_v36 }
 0x21f   :  { %908 = vpow2.f32 %v367_v19  ;;  %v341_v21 = vpop.xlane.xlu0 %340  ;;  %v375_v22 = vsel %vm93_vm1, %v1135_v20, 0.0 }
 0x220   :  { %v351_v23 = vsub.f32 %v319_v52, %v341_v21  ;;  %376 = vadd.xlane.f32.xlu2 %v375_v22 }
 0x222   :  { %v365_v24 = vmul.f32 1.442695, %v351_v23  ;;  %v338_v25 = vpop.xlane.xlu2 %337 }
 0x223   :  { %v350_v26 = vsub.f32 %v318_v53, %v338_v25 }
 0x224   :  { %910 = vpow2.f32 %v365_v24 }
 0x225   :  { %v1139_v27 = vpop.eup %908  ;;  %v363_v28 = vmul.f32 1.442695, %v350_v26 }
 0x226   :  { %v390_v29 = vsel %vm93_vm1, %v1139_v27, 0.0 }
 0x227   :  { %912 = vpow2.f32 %v363_v28  ;;  %391 = vadd.xlane.f32.xlu0 %v390_v29 }
 0x228   :  { %914 = vpow2.f32 %v353_v37 }
 0x22a   :  { %v1143_v30 = vpop.eup %910  ;;  %v335_v38 = vpop.xlane.xlu2 %334 }
 0x22b   :  { %v387_v31 = vsel %vm93_vm1, %v1143_v30, 0.0  ;;  %v349_v39 = vsub.f32 %v317_v57, %v335_v38 }
 0x22c   :  { %388 = vadd.xlane.f32.xlu2 %v387_v31 }
 0x22d   :  { %v1147_v32 = vpop.eup %912  ;;  %v361_v41 = vmul.f32 1.442695, %v349_v39 }
 0x22e   :  { %v384_v33 = vsel %vm93_vm1, %v1147_v32, 0.0  ;;  %v1156_v40 = vpop.eup %914 }
 0x22f   :  { %385 = vadd.xlane.f32.xlu1 %v384_v33  ;;  %v369_v42 = vsel %vm93_vm1, %v1156_v40, 0.0  ;;  %916 = vpow2.f32 %v361_v41 }
 0x235   :  { %v1160_v44 = vpop.eup %916 }
 0x23b   :  { %877 = vrot.lane.b32.xlu0 %v876_v34, %s1023_s26 }
 0x244   :  { %887 = vrot.lane.b32.xlu2 %v876_v34, %s1024_s27 }
 0x248   :  { %882 = vrot.lane.b32.xlu1 %v876_v34, %s1025_s28 }
 0x24c   :  { %513 = vrot.lane.b32.xlu2 %v1079_v10, %s1026_s29  ;;  %v381_v10 = vsel %vm93_vm1, %v1160_v44, 0.0 }
 0x254   :  { %636 = vrot.lane.b32.xlu2 %v1085_v12, %s1026_s29 }
 0x25c   :  { %892 = vrot.lane.b32.xlu2 %v891_v2, %s1027_s30 }
 0x265   :  { %370 = vadd.xlane.f32.xlu0 %v369_v42 }
 0x272   :  { %382 = vadd.xlane.f32.xlu1 %v381_v10 }
 0x28a   :  { %v1172_v46 = vpop.xlane.xlu1 %373 }
 0x28b   :  { %897 = vrot.lane.b32.xlu1 %v896_v5, %s1027_s30 }
 0x28c   :  { %v380_v12 = vpop.xlane.xlu0 %379 }
 0x28d   :  { %918 = vrcp.f32 %v380_v12  ;;  %v446_v63 = vand.u32 2147483648, %v380_v12  ;;  %vm440_vm7 = vweird.f32 %v380_v12  ;;  %v444_v7 = vand.u32 2147483647, %v380_v12 }
 0x28f   :  { %v447_v24 = vor.u32 1.1754944e-38, %v446_v63  ;;  %vm445_vm9 = vcmp.eq.f32.partialorder %v444_v7, 8.507059e+37 }
 0x293   :  { %v377_v43 = vpop.xlane.xlu2 %376  ;;  %v919_v45 = vpop.eup %918 }
 0x294   :  { %920 = vrcp.f32 %v377_v43  ;;  %v436_v47 = vmul.f32 %v919_v45, %v380_v12  ;;  %v432_v50 = vand.u32 2147483648, %v377_v43  ;;  %vm426_vm3 = vweird.f32 %v377_v43 }
 0x295   :  { %922 = vrcp.f32 %v1172_v46  ;;  %v430_v54 = vand.u32 2147483647, %v377_v43  ;;  %vm441_vm5 = vweird.f32 %v919_v45 }
 0x296   :  { %v437_v1 = vsub.f32 1.0, %v436_v47  ;;  %v433_v59 = vor.u32 1.1754944e-38, %v432_v50  ;;  %vm1189_vm8 = vmor %vm440_vm7, %vm441_vm5  ;;  %vm412_vm5 = vweird.f32 %v1172_v46 }
 0x297   :  { %vm431_vm6 = vcmp.eq.f32.partialorder %v430_v54, 8.507059e+37 }
 0x298   :  { %v438_v52 = vmul.f32 %v919_v45, %v437_v1 }
 0x29a   :  { %v921_v48 = vpop.eup %920  ;;  %v1175_v49 = vpop.xlane.xlu0 %391  ;;  %v439_v60 = vadd.f32 %v919_v45, %v438_v52 }
 0x29b   :  { %v422_v0 = vmul.f32 %v921_v48, %v377_v43  ;;  %924 = vrcp.f32 %v1175_v49  ;;  %vm427_vm2 = vweird.f32 %v921_v48  ;;  %v1178_v5 = vpop.eup %922  ;;  %vm496_vm11 = vweird.f32 %v1175_v49 }
 0x29c   :  { %vm428_vm4 = vmor %vm426_vm3, %vm427_vm2  ;;  %v408_v58 = vmul.f32 %v1178_v5, %v1172_v46  ;;  %v443_v19 = vsel %vm1189_vm8, %v919_v45, %v439_v60  ;;  %v502_v34 = vand.u32 2147483648, %v1175_v49  ;;  %v500_v42 = vand.u32 2147483647, %v1175_v49 }
 0x29d   :  { %v423_v2 = vsub.f32 1.0, %v422_v0  ;;  %v448_v33 = vsel %vm445_vm9, %v447_v24, %v443_v19  ;;  %vm413_vm3 = vweird.f32 %v1178_v5 }
 0x29e   :  { %v409_v14 = vsub.f32 1.0, %v408_v58  ;;  %v508_v43 = vmul.f32 %v1131_v15, %v448_v33  ;;  %v503_v15 = vor.u32 1.1754944e-38, %v502_v34 }
 0x29f   :  { %v424_v3 = vmul.f32 %v921_v48, %v423_v2  ;;  %v389_v4 = vpop.xlane.xlu2 %388  ;;  %v418_v2 = vand.u32 2147483648, %v1172_v46 }
 0x2a0   :  { %926 = vrcp.f32 %v389_v4  ;;  %v488_v25 = vand.u32 2147483648, %v389_v4  ;;  %v486_v29 = vand.u32 2147483647, %v389_v4  ;;  %v410_v31 = vmul.f32 %v1178_v5, %v409_v14 }
 0x2a1   :  { %v1180_v51 = vpop.eup %924  ;;  %v425_v53 = vadd.f32 %v921_v48, %v424_v3  ;;  %vm482_vm13 = vweird.f32 %v389_v4  ;;  %v416_v3 = vand.u32 2147483647, %v1172_v46 }
 0x2a2   :  { %v492_v55 = vmul.f32 %v1180_v51, %v1175_v49  ;;  %v1184_v56 = vpop.xlane.xlu1 %385  ;;  %vm497_vm12 = vweird.f32 %v1180_v51  ;;  %v489_v37 = vor.u32 1.1754944e-38, %v488_v25  ;;  %vm487_vm15 = vcmp.eq.f32.partialorder %v486_v29, 8.507059e+37 }
 0x2a3   :  { %v429_v57 = vsel %vm428_vm4, %v921_v48, %v425_v53  ;;  %928 = vrcp.f32 %v1184_v56  ;;  %vm1211_vm2 = vmor %vm496_vm11, %vm497_vm12  ;;  %v411_v1 = vadd.f32 %v1178_v5, %v410_v31  ;;  %vm501_vm4 = vcmp.eq.f32.partialorder %v500_v42, 8.507059e+37 }
 0x2a4   :  { %v493_v61 = vsub.f32 1.0, %v492_v55  ;;  %v434_v6 = vsel %vm431_vm6, %v433_v59, %v429_v57  ;;  %vm414_vm6 = vmor %vm412_vm5, %vm413_vm3  ;;  %vm417_vm7 = vcmp.eq.f32.partialorder %v416_v3, 8.507059e+37  ;;  %v474_v57 = vand.u32 2147483648, %v1184_v56 }
 0x2a5   :  { %v507_v23 = vmul.f32 %v1135_v20, %v434_v6  ;;  %vm468_vm9 = vweird.f32 %v1184_v56  ;;  %v472_v59 = vand.u32 2147483647, %v1184_v56 }
 0x2a6   :  { %v927_v62 = vpop.eup %926  ;;  %v494_v21 = vmul.f32 %v1180_v51, %v493_v61  ;;  %v475_v61 = vor.u32 1.1754944e-38, %v474_v57 }
 0x2a7   :  { %v478_v9 = vmul.f32 %v927_v62, %v389_v4  ;;  %v888_v13 = vpop.permute.xlu2 %887  ;;  %vm483_vm10 = vweird.f32 %v927_v62  ;;  %vm473_vm11 = vcmp.eq.f32.partialorder %v472_v59, 8.507059e+37 }
 0x2a8   :  { %v890_v17 = vunpack.i.h.bf16 %v888_v13  ;;  %v889_v18 = vunpack.i.l.bf16 %v888_v13  ;;  %v495_v20 = vadd.f32 %v1180_v51, %v494_v21  ;;  %vm484_vm14 = vmor %vm482_vm13, %vm483_vm10 }
 0x2a9   :  { %v479_v22 = vsub.f32 1.0, %v478_v9  ;;  %v1197_v26 = vpop.eup %928 }
 0x2aa   :  { %593 = vmatpush.msrb.mxu1 %v889_v18  ;;  %v464_v38 = vmul.f32 %v1197_v26, %v1184_v56  ;;  %v499_v48 = vsel %vm1211_vm2, %v1180_v51, %v495_v20  ;;  %v419_v51 = vor.u32 1.1754944e-38, %v418_v2  ;;  %vm469_vm8 = vweird.f32 %v1197_v26 }
 0x2ab   :  { %v480_v28 = vmul.f32 %v927_v62, %v479_v22  ;;  %849 = vmatmul.msk.f32.vlgmr.msrb.gmra.mxu1 %vm93_vm1, %v507_v23  ;;  %v504_v4 = vsel %vm501_vm4, %v503_v15, %v499_v48  ;;  %vm470_vm10 = vmor %vm468_vm9, %vm469_vm8  ;;  %vm634_vm8 = vcmask 261312  }
 0x2ac   :  { %715 = vmatpush.msra.mxu1 %v890_v17  ;;  %v465_v49 = vsub.f32 1.0, %v464_v38  ;;  %v512_v53 = vmul.f32 %v1139_v27, %v504_v4 }
 0x2ad   :  { %v481_v35 = vadd.f32 %v927_v62, %v480_v28  ;;  %v878_v36 = vpop.permute.xlu0 %877 }
 0x2ae   :  { %v880_v39 = vunpack.i.h.bf16 %v878_v36  ;;  %v879_v41 = vunpack.i.l.bf16 %v878_v36  ;;  %v466_v50 = vmul.f32 %v1197_v26, %v465_v49 }
 0x2af   :  { %v485_v10 = vsel %vm484_vm14, %v927_v62, %v481_v35  ;;  %v514_v12 = vpop.permute.xlu2 %513 }
 0x2b0   :  { %v490_v47 = vsel %vm487_vm15, %v489_v37, %v485_v10  ;;  %534 = vmatpush.msrb.mxu3 %v514_v12  ;;  %625 = vmatpush.msrb.mxu2 %v879_v41  ;;  %v467_v55 = vadd.f32 %v1197_v26, %v466_v50 }
 0x2b1   :  { %850 = vmatmul.msk.f32.vlgmr.msrb.gmra.mxu2 %vm93_vm1, %v508_v43  ;;  %v511_v0 = vmul.f32 %v1143_v30, %v490_v47  ;;  %v415_v30 = vsel %vm414_vm6, %v1178_v5, %v411_v1  ;;  %vm570_vm6 = vcmask 130112  }
 0x2b2   :  { %746 = vmatpush.msra.mxu2 %v880_v39  ;;  %v420_v54 = vsel %vm417_vm7, %v419_v51, %v415_v30  ;;  %v471_v60 = vsel %vm470_vm10, %v1197_v26, %v467_v55  ;;  %vm602_vm7 = vcmask 195712  }
 0x2b3   :  { %853 = vmatmul.msk.f32.vlgmr.msra.gmra.mxu1 %vm93_vm1, %v511_v0  ;;  %v506_v27 = vmul.f32 %v1127_v11, %v420_v54  ;;  %v476_v62 = vsel %vm473_vm11, %v475_v61, %v471_v60 }
 0x2b4   :  { %v510_v63 = vmul.f32 %v1147_v32, %v476_v62 }
 0x2b7   :  { %v637_v52 = vpop.permute.xlu2 %636 }
 0x2b8   :  { %657 = vmatpush.msra.mxu3 %v637_v52 }
 0x2b9   :  { %854 = vmatmul.msk.f32.vlgmr.msra.gmra.mxu2 %vm93_vm1, %v512_v53 }
 0x2ba   :  { %v883_v46 = vpop.permute.xlu1 %882 }
 0x2bb   :  { %v885_v58 = vunpack.i.h.bf16 %v883_v46  ;;  %v884_v5 = vunpack.i.l.bf16 %v883_v46 }
 0x2bd   :  { %561 = vmatpush.msra.mxu0 %v884_v5 }
 0x2be   :  { %848 = vmatmul.msk.f32.vlgmr.msra.gmra.mxu0 %vm93_vm1, %v506_v27 }
 0x2bf   :  { %684 = vmatpush.msrb.mxu0 %v885_v58  ;;  %v893_v41 = vpop.permute.xlu2 %892 }
 0x2c0   :  { %v894_v42 = vunpack.i.l.bf16 %v893_v41 }
 0x2c6   :  { %852 = vmatmul.msk.f32.vlgmr.msrb.gmra.mxu0 %vm93_vm1, %v510_v63 }
 0x2d8   :  { %v371_v6 = vpop.xlane.xlu0 %370 }
 0x2d9   :  { %930 = vrcp.f32 %v371_v6  ;;  %v404_v11 = vand.u32 2147483648, %v371_v6  ;;  %v402_v14 = vand.u32 2147483647, %v371_v6  ;;  %vm398_vm13 = vweird.f32 %v371_v6 }
 0x2db   :  { %v405_v18 = vor.u32 1.1754944e-38, %v404_v11  ;;  %vm403_vm15 = vcmp.eq.f32.partialorder %v402_v14, 8.507059e+37 }
 0x2df   :  { %v931_v7 = vpop.eup %930 }
 0x2e0   :  { %v394_v56 = vmul.f32 %v931_v7, %v371_v6  ;;  %vm399_vm12 = vweird.f32 %v931_v7 }
 0x2e1   :  { %vm400_vm14 = vmor %vm398_vm13, %vm399_vm12 }
 0x2e2   :  { %v395_v9 = vsub.f32 1.0, %v394_v56 }
 0x2e4   :  { %v396_v13 = vmul.f32 %v931_v7, %v395_v9 }
 0x2e5   :  { %v383_v16 = vpop.xlane.xlu1 %382 }
 0x2e6   :  { %v397_v17 = vadd.f32 %v931_v7, %v396_v13  ;;  %932 = vrcp.f32 %v383_v16  ;;  %v460_v25 = vand.u32 2147483648, %v383_v16  ;;  %v458_v28 = vand.u32 2147483647, %v383_v16 }
 0x2e7   :  { %vm454_vm3 = vweird.f32 %v383_v16 }
 0x2e8   :  { %v401_v19 = vsel %vm400_vm14, %v931_v7, %v397_v17  ;;  %v461_v31 = vor.u32 1.1754944e-38, %v460_v25  ;;  %vm459_vm5 = vcmp.eq.f32.partialorder %v458_v28, 8.507059e+37 }
 0x2e9   :  { %v406_v32 = vsel %vm403_vm15, %v405_v18, %v401_v19 }
 0x2ea   :  { %v505_v21 = vmul.f32 %v1156_v40, %v406_v32 }
 0x2ec   :  { %v933_v22 = vpop.eup %932  ;;  %847 = vmatmul.msk.f32.vlgmr.msrb.gmra.mxu3 %vm93_vm1, %v505_v21 }
 0x2ed   :  { %v450_v23 = vmul.f32 %v933_v22, %v383_v16  ;;  %vm455_vm2 = vweird.f32 %v933_v22  ;;  %796 = vmatpush.msrb.mxu3 %v894_v42 }
 0x2ee   :  { %vm456_vm4 = vmor %vm454_vm3, %vm455_vm2 }
 0x2ef   :  { %v451_v24 = vsub.f32 1.0, %v450_v23 }
 0x2f1   :  { %v452_v26 = vmul.f32 %v933_v22, %v451_v24 }
 0x2f3   :  { %v453_v29 = vadd.f32 %v933_v22, %v452_v26 }
 0x2f5   :  { %v457_v33 = vsel %vm456_vm4, %v933_v22, %v453_v29 }
 0x2f6   :  { %v462_v34 = vsel %vm459_vm5, %v461_v31, %v457_v33 }
 0x2f7   :  { %v509_v20 = vmul.f32 %v1160_v44, %v462_v34  ;;  %v895_v44 = vunpack.i.h.bf16 %v893_v41 }
 0x2f9   :  { %851 = vmatmul.msk.f32.vlgmr.msra.gmra.mxu3 %vm93_vm1, %v509_v20 }
 0x2fa   :  { %797 = vmatpush.msrb.mxu3 %v895_v44 }
 0x2fd   :  { %v898_v43 = vpop.permute.xlu1 %897 }
 0x2fe   :  { %v900_v45 = vunpack.i.h.bf16 %v898_v43  ;;  %v899_v47 = vunpack.i.l.bf16 %v898_v43 }
 0x300   :  { %798 = vmatpush.msrb.mxu3 %v899_v47 }
 0x302   :  { %799 = vmatpush.msrb.mxu3 %v900_v45 }
 0x328   :  { %v595_v40 = vpop.f32.mrf.mxu1 }
 0x329   :  { %599 = vrot.lane.b32.xlu2 %v595_v40, %s1028_s3 }
 0x330   :  { %v717_v39 = vpop.f32.mrf.mxu1 }
 0x334   :  { %v627_v35 = vpop.f32.mrf.mxu2 }
 0x335   :  { %631 = vrot.lane.b32.xlu0 %v627_v35, %s1029_s4 }
 0x33b   :  { %v563_v36 = vpop.f32.mrf.mxu0 }
 0x33c   :  { %567 = vrot.lane.b32.xlu2 %v563_v36, %s1014_s18  ;;  %v748_v37 = vpop.f32.mrf.mxu2 }
 0x33d   :  { %752 = vrot.lane.b32.xlu0 %v748_v37, %s1029_s4 }
 0x343   :  { %v686_v38 = vpop.f32.mrf.mxu0 }
 0x344   :  { %690 = vrot.lane.b32.xlu2 %v686_v38, %s1014_s18 }
 0x34c   :  { %721 = vrot.lane.b32.xlu2 %v717_v39, %s1028_s3 }
 0x354   :  { %775 = vrot.lane.b32.xlu2 %v1076_v8, %s1027_s30 }
 0x36f   :  { %v536_v10 = vpop.f32.mrf.mxu3 }
 0x370   :  { %539 = vst.msk [vmem:[#allocation2] sm:$0xff] %vm93_vm1, %v536_v10 }
 0x37c   :  { %v659_v12 = vpop.f32.mrf.mxu3 }
 0x37d   :  { %662 = vst.msk [vmem:[#allocation2 + $0x8] sm:$0xff] %vm93_vm1, %v659_v12 }
 0x383   :  { %v600_v48 = vpop.permute.xlu2 %599 }
 0x396   :  { %v568_v0 = vpop.permute.xlu2 %567 }
 0x397   :  { %571 = vst.msk [vmem:[#allocation2] sm:$0xff] %vm570_vm6, %v568_v0 }
 0x398   :  { %603 = vst.msk [vmem:[#allocation2] sm:$0xff] %vm602_vm7, %v600_v48 }
 0x39e   :  { %v691_v1 = vpop.permute.xlu2 %690 }
 0x39f   :  { %693 = vst.msk [vmem:[#allocation2 + $0x8] sm:$0xff] %vm570_vm6, %v691_v1 }
 0x3a6   :  { %v722_v8 = vpop.permute.xlu2 %721 }
 0x3a7   :  { %724 = vst.msk [vmem:[#allocation2 + $0x8] sm:$0xff] %vm602_vm7, %v722_v8  ;;  %v632_v15 = vpop.permute.xlu0 %631 }
 0x3a8   :  { %635 = vst.msk [vmem:[#allocation2] sm:$0xff] %vm634_vm8, %v632_v15 }
 0x3ae   :  { %v776_v4 = vpop.permute.xlu2 %775 }
 0x3af   :  { %v753_v49 = vpop.permute.xlu0 %752  ;;  %v756_v2 = vld [vmem:[#allocation2] sm:$0xff] }
 0x3b0   :  { %755 = vst.msk [vmem:[#allocation2 + $0x8] sm:$0xff] %vm634_vm8, %v753_v49  ;;  %855 = vmatmul.msk.f32.vlgmr.msrb.gmra.mxu3 %vm60_vm0, %v756_v2 }
 0x3b7   :  { %v757_v3 = vld [vmem:[#allocation2 + $0x8] sm:$0xff] }
 0x3b8   :  { %856 = vmatmul.msk.f32.gmra.mxu3 %vm60_vm0, %v757_v3 }
 0x433   :  { %v801_v30 = vpop.f32.mrf.mxu3 }
 0x434   :  { %v802_v50 = vadd.f32 %v801_v30, %v776_v4 }
 0x436   :  { %807 = vst.msk [vmem:[#allocation8] sm:$0xff] %vm60_vm0, %v802_v50 }
 0x43b   :  { %v804_v51 = vpop.f32.mrf.mxu3 }
 0x43c   :  { %v805_v52 = vadd.f32 %v804_v51, %v776_v4 }
 0x43e   :  { %808 = vst.msk [vmem:[#allocation8 + $0x8] sm:$0xff] %vm60_vm0, %v805_v52 }
 0x43f   :  { %821 = dma.vmem_to_hbm [thread:$0]  %s814_s6, 256, %s816_s9, [#allocation5], %s1013_s17, %s1013_s17, %s1014_s18  }
 0x440   :  { %1010 = dma.done.wait [#allocation5], 256  }
 0x441   :  { %1011 = vsyncadd [#allocation5], 4294967040 }
 0x442   :  { %826 = vsyncpa [#allocation4], 1 }
 0x443   :  { %827 = vsyncpa [#allocation7], 1 }
 0x444   :  { %828 = vsyncpa [#allocation5], 1 }

</bundles_post_ra>
